<compile_context>
chip_gen: v7x
topology: tpu7x:2x2x1
jax: 0.10.0
libtpu: 0.0.40
codegen_flags: <defaults>
</compile_context>

<pallas_src>
import jax
import jax.numpy as jnp
from jax.experimental import pallas as pl
from jax.experimental.pallas import tpu as pltpu


def _round_up(x, m):
    return ((x + m - 1) // m) * m


def _vmem_capacity_bytes():
    try:
        return int(pltpu.get_tpu_info().vmem_capacity_bytes)
    except Exception:
        return 64 * 1024 * 1024  # conservative: v7x per-TC VMEM


def _choose_tile_b(B, D, itemsize):
    """Rows per grid step: sized by bytes, VMEM-aware, >=2 steps for big batches."""
    vmem_cap = _vmem_capacity_bytes()
    # One x buffer targets <= 8 MiB and <= 1/8 of VMEM (x is double-buffered).
    per_buf_target = min(8 * 1024 * 1024, vmem_cap // 8)
    row_bytes = max(1, D * itemsize)
    tb = max(128, (per_buf_target // row_bytes) // 128 * 128)
    # Keep >= 2 grid steps on large batches so the "parallel" axis actually
    # shards across both v7x TensorCores.
    if B >= 256:
        half = _round_up(-(-B // 2), 128)
        tb = min(tb, half)
    # Whole batch fits in one tile -> use the full array (always a legal block).
    if tb >= B:
        return B
    return tb


def _vmem_estimate(TB, D, x_itemsize):
    """Conservative VMEM footprint incl. (8,128) padding and double buffering."""
    x_tile = _round_up(TB, 8) * _round_up(D, 128) * max(x_itemsize, 1)
    w_tile = _round_up(D, 8) * 128 * 4          # (D, 1) f32, lane-padded
    o_tile = _round_up(TB, 8) * 128 * 4         # (TB, 1) f32, lane-padded
    slack = 2 * 1024 * 1024                     # Mosaic internal scratch
    return 2 * x_tile + 2 * w_tile + 2 * o_tile + slack


def _logreg_kernel(x_ref, w_ref, b_ref, o_ref):
    # x_ref: (TB, D) native dtype | w_ref: (D, 1) f32 | b_ref: (1,) f32 SMEM
    # o_ref: (TB, 1) f32
    x = x_ref[...].astype(jnp.float32)          # in-kernel upcast (no HBM copy)
    logits = jnp.dot(x, w_ref[...], preferred_element_type=jnp.float32)
    o_ref[...] = jax.nn.sigmoid(logits + b_ref[0])


def logistic_regression(x, weight, bias):
    """x: (B, D) any float dtype; weight: (1, D) (torch Linear layout); bias: (1,).

    Returns sigmoid(x @ weight.T + bias) as (B, 1) float32.
    """
    B, D = x.shape
    itemsize = jnp.dtype(x.dtype).itemsize
    TB = _choose_tile_b(B, D, itemsize)
    grid = (pl.cdiv(B, TB),)

    w_t = weight.astype(jnp.float32).reshape(1, D).T    # (D, 1), tiny host-side reshape
    b = bias.astype(jnp.float32).reshape((1,))          # scalar -> SMEM

    vmem_cap = _vmem_capacity_bytes()
    vmem_limit = int(min(max(_vmem_estimate(TB, D, itemsize), 32 * 1024 * 1024), vmem_cap))

    out = pl.pallas_call(
        _logreg_kernel,
        out_shape=jax.ShapeDtypeStruct((B, 1), jnp.float32),
        grid=grid,
        in_specs=[
            pl.BlockSpec((TB, D), lambda i: (i, 0)),                  # x row tile (native dtype)
            pl.BlockSpec((D, 1), lambda i: (0, 0)),                   # weight, resident
            pl.BlockSpec(memory_space=pltpu.MemorySpace.SMEM),        # bias scalar
        ],
        out_specs=pl.BlockSpec((TB, 1), lambda i: (i, 0)),
        compiler_params=pltpu.CompilerParams(
            dimension_semantics=("parallel",),
            vmem_limit_bytes=vmem_limit,
        ),
    )(x, w_t, b)
    return out


if __name__ == "__main__":
    key = jax.random.PRNGKey(0)
    k_x, k_w, k_b, k_x2, k_x3 = jax.random.split(key, 5)

    # Shapes consistent with the module (coefficients.shape[1] -> in_features).
    batch, features = 8, 32
    x = jax.random.normal(k_x, (batch, features), dtype=jnp.float32)
    weight = jax.random.normal(k_w, (1, features), dtype=jnp.float32) * 0.1
    bias = jax.random.normal(k_b, (1,), dtype=jnp.float32) * 0.1

    y = jax.block_until_ready(logistic_regression(x, weight, bias))
    y_ref = jax.nn.sigmoid(x @ weight.T + bias)
    assert y.shape == (batch, 1)
    assert jnp.allclose(y, y_ref, atol=1e-5), "mismatch vs reference (small batch)"

    # Batch not a multiple of the tile -> exercises partial last block (no jnp.pad).
    batch2 = 300
    x2 = jax.random.normal(k_x2, (batch2, features), dtype=jnp.float32)
    y2 = jax.block_until_ready(logistic_regression(x2, weight, bias))
    y2_ref = jax.nn.sigmoid(x2 @ weight.T + bias)
    assert y2.shape == (batch2, 1)
    assert jnp.allclose(y2, y2_ref, atol=1e-5), "mismatch vs reference (partial block)"

    # Sub-f32 input: no wrapper upcast, cast happens inside the kernel.
    x3 = jax.random.normal(k_x3, (batch, features), dtype=jnp.float32).astype(jnp.bfloat16)
    y3 = jax.block_until_ready(logistic_regression(x3, weight, bias))
    y3_ref = jax.nn.sigmoid(x3.astype(jnp.float32) @ weight.T + bias)
    assert y3.shape == (batch, 1)
    assert jnp.allclose(y3, y3_ref, atol=2e-3), "mismatch vs reference (bf16 input)"

    print("KERNEL_OK")
</pallas_src>

<mosaic_0001>
module attributes {stable_mosaic.version = 11 : i64} {
  func.func @_logreg_kernel(%arg0: i32, %arg1: memref<8x32xf32, #tpu.memory_space<vmem>>, %arg2: memref<32x1xf32, #tpu.memory_space<vmem>>, %arg3: memref<1xf32, #tpu.memory_space<smem>>, %arg4: memref<8x1xf32, #tpu.memory_space<vmem>>) attributes {dimension_semantics = [#tpu.dimension_semantics<parallel>], iteration_bounds = array<i64: 1>, scalar_prefetch = 0 : i64, scratch_operands = 0 : i64, tpu.core_type = #tpu.core_type<tc>, window_params = [{transform_indices = @transform_0, window_bounds = array<i64: 8, 32>}, {pipeline_mode = #tpu.pipeline_mode<synchronous>, transform_indices = @transform_1, window_bounds = array<i64: 32, 1>}, {transform_indices = @transform_2, window_bounds = array<i64: 1>}, {transform_indices = @transform_3, window_bounds = array<i64: 8, 1>}]} {
    %c0 = arith.constant 0 : index
    %c0_0 = arith.constant 0 : index
    %0 = vector.load %arg1[%c0, %c0_0] : memref<8x32xf32, #tpu.memory_space<vmem>>, vector<8x32xf32>
    %c0_1 = arith.constant 0 : index
    %c0_2 = arith.constant 0 : index
    %1 = vector.load %arg2[%c0_1, %c0_2] : memref<32x1xf32, #tpu.memory_space<vmem>>, vector<32x1xf32>
    %cst = arith.constant dense<0.000000e+00> : vector<8x1xf32>
    %2 = tpu.matmul %0, %1, %cst {dimension_numbers = #tpu.dot_dimension_numbers<[1], [0], [0], [1], [0, 0, 1, 1], [], []>} : vector<8x32xf32>, vector<32x1xf32>, vector<8x1xf32> -> vector<8x1xf32>
    %c0_3 = arith.constant 0 : index
    %3 = memref.load %arg3[%c0_3] : memref<1xf32, #tpu.memory_space<smem>>
    %4 = vector.broadcast %3 : f32 to vector<8x1xf32>
    %5 = arith.addf %2, %4 : vector<8x1xf32>
    %6 = arith.negf %5 : vector<8x1xf32>
    %7 = math.exp %6 : vector<8x1xf32>
    %cst_4 = arith.constant 1.000000e+00 : f32
    %8 = vector.broadcast %cst_4 : f32 to vector<8x1xf32>
    %9 = arith.addf %8, %7 : vector<8x1xf32>
    %10 = arith.divf %8, %9 : vector<8x1xf32>
    %c0_5 = arith.constant 0 : index
    %c0_6 = arith.constant 0 : index
    %11 = vector.load %arg4[%c0_5, %c0_6] : memref<8x1xf32, #tpu.memory_space<vmem>>, vector<8x1xf32>
    tpu.vector_store %arg4[%c0_5, %c0_6], %10 {strides = array<i32>} : memref<8x1xf32, #tpu.memory_space<vmem>>, vector<8x1xf32>,
    return
  }
  func.func @transform_0(%arg0: i32) -> (i32, i32) {
    %c0_i32 = arith.constant 0 : i32
    %c0_i32_0 = arith.constant 0 : i32
    return %arg0, %c0_i32 : i32, i32
  }
  func.func @transform_1(%arg0: i32) -> (i32, i32) {
    %c0_i32 = arith.constant 0 : i32
    %c0_i32_0 = arith.constant 0 : i32
    %c0_i32_1 = arith.constant 0 : i32
    return %c0_i32, %c0_i32_0 : i32, i32
  }
  func.func @transform_2(%arg0: i32) -> i32 {
    %c0_i32 = arith.constant 0 : i32
    %c0_i32_0 = arith.constant 0 : i32
    return %c0_i32 : i32
  }
  func.func @transform_3(%arg0: i32) -> (i32, i32) {
    %c0_i32 = arith.constant 0 : i32
    %c0_i32_0 = arith.constant 0 : i32
    return %arg0, %c0_i32 : i32, i32
  }
}

</mosaic_0001>

<bundles_post_ra>
// kernel: tpu_custom_call.1
= control target key start
LH: loop header
LB: loop body
LE: loop exit
PB: predicated region body
PF: predicated region fallthrough
CT: control target
= control target key end

     0   :  { %v139_v0 = vmov 0.0|0.0   ;;  %vm140_vm0 = vmmov 0   ;;  %v141_v4 = vmov 0.0   ;;  %vm22_vm1 = vcmask 261120   ;;  %s183_s1 = inlined_call_operand.vmem [shape: f32[32,1], index: 1, kind: input, shape index: {}]   ;;  %s184_s0 = inlined_call_operand.vmem [shape: f32[8,32], index: 0, kind: input, shape index: {}]   ;;  %s185_s2 = inlined_call_operand.<no memory space> [shape: f32[1], index: 2, kind: input, shape index: {}]   ;;  %s186_s3 = inlined_call_operand.vmem [shape: f32[8,1], index: 3, kind: output, shape index: {}]  }
   0x1   :  { %126 = vmatprep.subr.bf16.mxu0 %v139_v0  ;;  %v16_v1 = vld [vmem:[%s183_s1] sm:$0xff]  ;;  %v17_v2 = vld [vmem:[%s183_s1 + $0x8] sm:$0xff]  ;;  %v18_v3 = vld [vmem:[%s183_s1 + $0x10] sm:$0xff]  ;;  %123 = vmatprep.mubr.msk.f32.mxu0 %vm140_vm0, %v141_v4  ;;  %v21_v9 = vstv %s185_s2  ;;  %vm102_vm2 = vcmask 7168  }
   0x2   :  { %v127_v5 = vpack.c.bf16 %v17_v2, %v16_v1  ;;  %v19_v6 = vld [vmem:[%s183_s1 + $0x18] sm:$0xff]  ;;  %v15_v8 = vld [vmem:[%s184_s0] sm:$0xff] }
   0x3   :  { %v130_v7 = vpack.c.bf16 %v19_v6, %v18_v3 }
   0x4   :  { %128 = vmatpush3.bf16.msra.mxu0 %v127_v5 }
   0x5   :  { %129 = vmatprep.subr.bf16.mxu0 %v139_v0 }
   0x8   :  { %131 = vmatpush3.bf16.msra.mxu0 %v130_v7 }
   0xb   :  { %124 = vmatmul.mubr.msk.f32.vlgmr.msra.gmra.mrb[0].mxu0 %vm22_vm1, %v15_v8 }
  0xde   :  { %v92_v10 = vpop.f32.mrb[0].mxu0 }
  0xdf   :  { %v93_v11 = vadd.f32 %v92_v10, %v21_v9  ;;  %v125_v12 = vpop.f32.mrb[1].mxu0 }
  0xe1   :  { %v109_v13 = vmul.f32 -1.442695, %v93_v11 }
  0xe3   :  { %135 = vpow2.f32 %v109_v13 }
  0xed   :  { %v136_v14 = vpop.eup %135 }
  0xee   :  { %v99_v15 = vadd.f32 1.0, %v136_v14 }
  0xf0   :  { %137 = vrcp.f32 %v99_v15 }
  0xfa   :  { %v138_v16 = vpop.eup %137 }
  0xfb   :  { %103 = vst.msk [vmem:[%s186_s3] sm:$0xff] %vm102_vm2, %v138_v16 }

</bundles_post_ra>
